<compile_context>
chip_gen: v7x
topology: tpu7x:2x2x1
jax: 0.10.0
libtpu: 0.0.40
codegen_flags: <defaults>
</compile_context>

<pallas_src>
import functools
import math

import jax
import jax.numpy as jnp
from jax.experimental import pallas as pl
from jax.experimental.pallas import tpu as pltpu

# ---------------- model config (small but consistent with the module) ----------------
HIDDEN = 768          # fixed by fc1 = nn.Linear(768, 512)
N_HEADS = 12
HEAD_DIM = HIDDEN // N_HEADS
FFN = 3072
N_LAYERS = 2          # small synthetic backbone
VOCAB = 128
MAX_POS = 64
N_TYPES = 2
N_CLASSES = 4
LN_EPS = 1e-12


# ---------------- device limits & tile targets ----------------
def _vmem_capacity_bytes():
    try:
        return int(pltpu.get_tpu_info().vmem_capacity_bytes)
    except Exception:
        return 64 << 20          # conservative fallback (v7x-sized VMEM)


_VMEM_CAP = _vmem_capacity_bytes()
# Unified matmul tile targets across generations: with K=768 the per-step footprint at
# 512x1024 is ~8.5 MiB, far below even the v7x 48 MiB scoped limit.
_TM, _TN, _TK = 512, 1024, 768
_FFN_TM = 512                    # fused-FFN footprint at tm=512 is ~30 MiB -> fits everywhere
_VMEM_LIMIT = (96 << 20) if _VMEM_CAP >= (96 << 20) else (48 << 20)


# pipeline_mode=pl.Buffered(1) lets constant-index weight blocks be single-buffered
# (saves ~9 MiB of second weight buffers in the fused FFN on v7x). Feature-detected by
# actually running a tiny kernel so older Pallas versions fall back cleanly.
def _detect_buffered():
    try:
        def _copy_kernel(x_ref, o_ref):
            o_ref[...] = x_ref[...]

        spec = pl.BlockSpec((8, 128), lambda i: (0, 0), pipeline_mode=pl.Buffered(1))
        f = pl.pallas_call(
            _copy_kernel,
            out_shape=jax.ShapeDtypeStruct((8, 128), jnp.float32),
            grid_spec=pltpu.PrefetchScalarGridSpec(
                num_scalar_prefetch=0, grid=(1,),
                in_specs=[spec],
                out_specs=pl.BlockSpec((8, 128), lambda i: (0, 0))))
        jax.block_until_ready(f(jnp.zeros((8, 128), jnp.float32)))
        return True
    except Exception:
        return False


_HAS_BUFFERED = _detect_buffered()


def _const_spec(shape, index_map):
    """BlockSpec whose block index never changes across the grid -> single-buffer it."""
    if _HAS_BUFFERED:
        return pl.BlockSpec(shape, index_map, pipeline_mode=pl.Buffered(1))
    return pl.BlockSpec(shape, index_map)


def _tile_rows(m, target):
    """Row tile: 16-aligned (bf16 sublane packing) when possible, 8-aligned otherwise,
    and clamped so the row-parallel grid has >=2 blocks whenever m allows
    (keeps both v7x TensorCores busy). Always returns a divisor of m."""
    cap = min(target, max(m // 2, 1))
    for align in (16, 8):
        best = None
        t = align
        while t <= cap:
            if m % t == 0:
                best = t
            t += align
        if best is not None:
            return best
    return m


def _tile_cols(dim, target):
    """Largest 128-multiple divisor of dim <= target (lane dimension), else full dim."""
    if dim <= target:
        return dim
    best = None
    t = 128
    while t <= target:
        if dim % t == 0:
            best = t
        t += 128
    return best if best is not None else dim


# ---------------- tiled linear (bias + optional activation fused) ----------------
def _matmul_1k_kernel(x_ref, w_ref, b_ref, o_ref, *, activation):
    # Single K step: compute + bias/activation + store directly (no f32 scratch).
    y = jnp.dot(x_ref[...], w_ref[...], preferred_element_type=jnp.float32) + b_ref[...]
    if activation == "relu":
        y = jnp.maximum(y, 0.0)
    elif activation == "gelu":
        y = jax.nn.gelu(y, approximate=True)
    o_ref[...] = y.astype(o_ref.dtype)


def _matmul_kernel(x_ref, w_ref, b_ref, o_ref, acc_ref, *, activation):
    kq = pl.program_id(2)

    @pl.when(kq == 0)
    def _():
        acc_ref[...] = jnp.zeros_like(acc_ref)

    acc_ref[...] += jnp.dot(x_ref[...], w_ref[...],
                            preferred_element_type=jnp.float32)

    @pl.when(kq == pl.num_programs(2) - 1)
    def _():
        y = acc_ref[...] + b_ref[...]
        if activation == "relu":
            y = jnp.maximum(y, 0.0)
        elif activation == "gelu":
            y = jax.nn.gelu(y, approximate=True)
        o_ref[...] = y.astype(o_ref.dtype)


def matmul(x, w, b, activation=None, out_dtype=jnp.bfloat16):
    """Tiled x:(M,K) @ w:(K,N) + b:(N,), bf16 operands into the MXU, f32 accumulation."""
    m, k = x.shape
    n = w.shape[1]
    tm = _tile_rows(m, _TM)
    tn = _tile_cols(n, _TN)
    tk = _tile_cols(k, _TK)
    b2 = b.reshape(1, n)

    if tk == k:
        kern = functools.partial(_matmul_1k_kernel, activation=activation)
        return pl.pallas_call(
            kern,
            out_shape=jax.ShapeDtypeStruct((m, n), out_dtype),
            grid_spec=pltpu.PrefetchScalarGridSpec(
                num_scalar_prefetch=0,
                grid=(m // tm, n // tn),
                in_specs=[pl.BlockSpec((tm, k), lambda i, j: (i, 0)),
                          pl.BlockSpec((k, tn), lambda i, j: (0, j)),
                          pl.BlockSpec((1, tn), lambda i, j: (0, j))],
                out_specs=pl.BlockSpec((tm, tn), lambda i, j: (i, j))),
            compiler_params=pltpu.CompilerParams(
                dimension_semantics=("parallel", "parallel"),
                vmem_limit_bytes=_VMEM_LIMIT),
        )(x, w, b2)

    kern = functools.partial(_matmul_kernel, activation=activation)
    return pl.pallas_call(
        kern,
        out_shape=jax.ShapeDtypeStruct((m, n), out_dtype),
        grid_spec=pltpu.PrefetchScalarGridSpec(
            num_scalar_prefetch=0,
            grid=(m // tm, n // tn, k // tk),
            in_specs=[pl.BlockSpec((tm, tk), lambda i, j, kq: (i, kq)),
                      pl.BlockSpec((tk, tn), lambda i, j, kq: (kq, j)),
                      pl.BlockSpec((1, tn), lambda i, j, kq: (0, j))],
            out_specs=pl.BlockSpec((tm, tn), lambda i, j, kq: (i, j)),
            scratch_shapes=[pltpu.VMEM((tm, tn), jnp.float32)]),
        compiler_params=pltpu.CompilerParams(
            dimension_semantics=("parallel", "parallel", "arbitrary"),
            vmem_limit_bytes=_VMEM_LIMIT),
    )(x, w, b2)


# ---------------- fused attention + output projection + residual + LayerNorm ----------------
def _attn_proj_ln_kernel(qkv_ref, mb_ref, wo_ref, bo_ref, res_ref, g_ref, be_ref,
                         o_ref, ctx_ref, *, eps):
    # qkv_ref: (1, S, 3*768) fused projections; 1/sqrt(head_dim) already folded into Wq.
    mb = mb_ref[0]                                   # (1, S) additive mask bias, f32
    for hp in range(N_HEADS // 2):                   # static head-pair loop
        pair = []
        for h in (2 * hp, 2 * hp + 1):
            lo = h * HEAD_DIM
            qh = qkv_ref[0, :, lo:lo + HEAD_DIM]                              # (S, 64)
            kh = qkv_ref[0, :, HIDDEN + lo:HIDDEN + lo + HEAD_DIM]
            vh = qkv_ref[0, :, 2 * HIDDEN + lo:2 * HIDDEN + lo + HEAD_DIM]
            s = jax.lax.dot_general(qh, kh, (((1,), (1,)), ((), ())),
                                    preferred_element_type=jnp.float32)       # (S, S)
            s = s + mb
            mx = jnp.max(s, axis=-1, keepdims=True)
            p = jnp.exp(s - mx)
            # approx reciprocal rides the EUP slot; ~1e-4 relative error in row normalization
            p = p * pl.reciprocal(jnp.sum(p, axis=-1, keepdims=True), approx=True)
            pair.append(jnp.dot(p.astype(vh.dtype), vh,
                                preferred_element_type=jnp.float32))          # (S, 64)
        # 128-lane-aligned store of the head pair: only two (S,64) ctx tiles ever live.
        ctx_ref[:, hp * 2 * HEAD_DIM:(hp + 1) * 2 * HEAD_DIM] = (
            jnp.concatenate(pair, axis=-1).astype(ctx_ref.dtype))
    # fused epilogue: attention output projection + residual add + LayerNorm
    y = jnp.dot(ctx_ref[...], wo_ref[...], preferred_element_type=jnp.float32)
    y = y + bo_ref[...] + res_ref[0].astype(jnp.float32)
    mu = jnp.mean(y, axis=-1, keepdims=True)
    var = jnp.mean((y - mu) ** 2, axis=-1, keepdims=True)
    yn = (y - mu) * jax.lax.rsqrt(var + eps)
    o_ref[0] = (yn * g_ref[...] + be_ref[...]).astype(o_ref.dtype)


def attention_proj_ln(qkv, mask_bias, wo, bo, residual, gamma, beta,
                      out_dtype=jnp.bfloat16):
    """LayerNorm(residual + MHA(qkv) @ wo + bo); the (S,768) context never leaves VMEM."""
    # TODO(synk): for B == 1 add a query-row grid axis so both v7x TensorCores get work.
    b, s, _ = qkv.shape
    kern = functools.partial(_attn_proj_ln_kernel, eps=LN_EPS)
    return pl.pallas_call(
        kern,
        out_shape=jax.ShapeDtypeStruct((b, s, HIDDEN), out_dtype),
        grid_spec=pltpu.PrefetchScalarGridSpec(
            num_scalar_prefetch=0,
            grid=(b,),
            in_specs=[pl.BlockSpec((1, s, 3 * HIDDEN), lambda bi: (bi, 0, 0)),  # fused QKV
                      pl.BlockSpec((1, 1, s), lambda bi: (bi, 0, 0)),           # mask bias
                      _const_spec((HIDDEN, HIDDEN), lambda bi: (0, 0)),         # wo
                      _const_spec((1, HIDDEN), lambda bi: (0, 0)),              # bo
                      pl.BlockSpec((1, s, HIDDEN), lambda bi: (bi, 0, 0)),      # residual
                      _const_spec((1, HIDDEN), lambda bi: (0, 0)),              # ln gamma
                      _const_spec((1, HIDDEN), lambda bi: (0, 0))],             # ln beta
            out_specs=pl.BlockSpec((1, s, HIDDEN), lambda bi: (bi, 0, 0)),
            scratch_shapes=[pltpu.VMEM((s, HIDDEN), jnp.bfloat16)]),
        compiler_params=pltpu.CompilerParams(
            dimension_semantics=("parallel",),
            vmem_limit_bytes=_VMEM_LIMIT),
    )(qkv, mask_bias, wo, bo.reshape(1, HIDDEN), residual,
      gamma.reshape(1, HIDDEN), beta.reshape(1, HIDDEN))


# ---------------- fused FFN (ffn1 + GELU + ffn2 + residual + LayerNorm) ----------------
def _ffn_res_ln_kernel(x_ref, w1_ref, b1_ref, w2_ref, b2_ref, res_ref,
                       g_ref, be_ref, o_ref, *, eps):
    h = jnp.dot(x_ref[...], w1_ref[...], preferred_element_type=jnp.float32) + b1_ref[...]
    # TODO(synk): HF bert-base uses exact (erf) GELU; tanh approximation kept for robust lowering.
    h = jax.nn.gelu(h, approximate=True)
    y = jnp.dot(h.astype(jnp.bfloat16), w2_ref[...],
                preferred_element_type=jnp.float32) + b2_ref[...]
    y = y + res_ref[...].astype(jnp.float32)
    mu = jnp.mean(y, axis=-1, keepdims=True)
    var = jnp.mean((y - mu) ** 2, axis=-1, keepdims=True)
    yn = (y - mu) * jax.lax.rsqrt(var + eps)
    o_ref[...] = (yn * g_ref[...] + be_ref[...]).astype(o_ref.dtype)


def ffn_res_ln(x, w1, b1, w2, b2, residual, gamma, beta, out_dtype=jnp.bfloat16):
    """LayerNorm(residual + ffn2(gelu(ffn1(x)))); (tm,3072) intermediate never hits HBM."""
    m, h = x.shape
    f = w1.shape[1]
    tm = _tile_rows(m, _FFN_TM)
    kern = functools.partial(_ffn_res_ln_kernel, eps=LN_EPS)
    return pl.pallas_call(
        kern,
        out_shape=jax.ShapeDtypeStruct((m, h), out_dtype),
        grid_spec=pltpu.PrefetchScalarGridSpec(
            num_scalar_prefetch=0,
            grid=(m // tm,),
            in_specs=[pl.BlockSpec((tm, h), lambda i: (i, 0)),
                      _const_spec((h, f), lambda i: (0, 0)),   # w1: single-buffered
                      _const_spec((1, f), lambda i: (0, 0)),
                      _const_spec((f, h), lambda i: (0, 0)),   # w2: single-buffered
                      _const_spec((1, h), lambda i: (0, 0)),
                      pl.BlockSpec((tm, h), lambda i: (i, 0)),
                      _const_spec((1, h), lambda i: (0, 0)),
                      _const_spec((1, h), lambda i: (0, 0))],
            out_specs=pl.BlockSpec((tm, h), lambda i: (i, 0))),
        compiler_params=pltpu.CompilerParams(
            dimension_semantics=("parallel",),
            vmem_limit_bytes=_VMEM_LIMIT),
    )(x, w1, b1.reshape(1, f), w2, b2.reshape(1, h), residual,
      gamma.reshape(1, h), beta.reshape(1, h))


# ---------------- embedding LayerNorm ----------------
def _layernorm_kernel(x_ref, g_ref, b_ref, o_ref, *, eps):
    x = x_ref[...].astype(jnp.float32)
    mu = jnp.mean(x, axis=-1, keepdims=True)
    var = jnp.mean((x - mu) ** 2, axis=-1, keepdims=True)
    y = (x - mu) * jax.lax.rsqrt(var + eps)
    o_ref[...] = (y * g_ref[...] + b_ref[...]).astype(o_ref.dtype)


def layernorm(x, gamma, beta, out_dtype=jnp.bfloat16):
    r, h = x.shape
    tm = _tile_rows(r, _TM)
    kern = functools.partial(_layernorm_kernel, eps=LN_EPS)
    return pl.pallas_call(
        kern,
        out_shape=jax.ShapeDtypeStruct((r, h), out_dtype),
        grid_spec=pltpu.PrefetchScalarGridSpec(
            num_scalar_prefetch=0,
            grid=(r // tm,),
            in_specs=[pl.BlockSpec((tm, h), lambda i: (i, 0)),
                      _const_spec((1, h), lambda i: (0, 0)),
                      _const_spec((1, h), lambda i: (0, 0))],
            out_specs=pl.BlockSpec((tm, h), lambda i: (i, 0))),
        compiler_params=pltpu.CompilerParams(
            dimension_semantics=("parallel",),
            vmem_limit_bytes=_VMEM_LIMIT),
    )(x, gamma.reshape(1, h), beta.reshape(1, h))


# ---------------- classifier head (fc1->ReLU->fc2->ReLU->fc3->LogSoftmax) ----------------
def _head_kernel(x_ref, w1_ref, b1_ref, w2_ref, b2_ref, w3_ref, b3_ref, o_ref):
    # fc1 -> ReLU -> (dropout: identity at eval) -> fc2 -> ReLU -> fc3 -> LogSoftmax(dim=1)
    h = jnp.dot(x_ref[...], w1_ref[...], preferred_element_type=jnp.float32) + b1_ref[...]
    h = jnp.maximum(h, 0.0)
    h = jnp.dot(h.astype(jnp.bfloat16), w2_ref[...],
                preferred_element_type=jnp.float32) + b2_ref[...]
    h = jnp.maximum(h, 0.0)
    logits = jnp.dot(h.astype(jnp.bfloat16), w3_ref[...],
                     preferred_element_type=jnp.float32) + b3_ref[...]
    mx = jnp.max(logits, axis=-1, keepdims=True)
    z = logits - mx
    lse = jnp.log(jnp.sum(jnp.exp(z), axis=-1, keepdims=True))
    o_ref[...] = (z - lse).astype(o_ref.dtype)


def classifier_head(cls_hs, p):
    # NOTE: the 4-wide logits store is masked but only B rows long -> negligible.
    b = cls_hs.shape[0]
    return pl.pallas_call(
        _head_kernel,
        out_shape=jax.ShapeDtypeStruct((b, N_CLASSES), jnp.float32),
    )(cls_hs,
      p["fc1_w"], p["fc1_b"].reshape(1, -1),
      p["fc2_w"], p["fc2_b"].reshape(1, -1),
      p["fc3_w"], p["fc3_b"].reshape(1, -1))


# ---------------- BERT backbone (glue in JAX, hot path in Pallas) ----------------
def encoder_layer(p, x2, mask_bias, b, s):
    # fused Q/K/V projection: one (768, 2304) matmul, streamed once from HBM
    qkv = matmul(x2, p["w_qkv"], p["b_qkv"])                  # (B*S, 2304) bf16
    # fused attention + wo projection + residual + LayerNorm (context stays in VMEM)
    x = attention_proj_ln(qkv.reshape(b, s, 3 * HIDDEN), mask_bias,
                          p["wo"], p["bo"], x2.reshape(b, s, HIDDEN),
                          p["ln1_g"], p["ln1_b"])             # (B, S, 768) bf16
    x2 = x.reshape(b * s, HIDDEN)
    # fused FFN: ffn1 + GELU + ffn2 + residual + LayerNorm
    x2 = ffn_res_ln(x2, p["w_ffn1"], p["b_ffn1"], p["w_ffn2"], p["b_ffn2"],
                    x2, p["ln2_g"], p["ln2_b"])
    return x2


def bert_encoder(params, sent_id, mask):
    b, s = sent_id.shape
    emb = (params["word_emb"][sent_id]
           + params["pos_emb"][:s][None, :, :]
           + params["type_emb"][0][None, None, :]).astype(jnp.bfloat16)
    x2 = layernorm(emb.reshape(b * s, HIDDEN),
                   params["emb_ln_g"], params["emb_ln_b"])    # (B*S, 768) bf16
    # HuggingFace-style extended attention mask: additive -inf-ish bias for padding.
    mask_bias = ((1.0 - mask.astype(jnp.float32)) * -1e9).reshape(b, 1, s)
    for layer in params["layers"]:
        x2 = encoder_layer(layer, x2, mask_bias, b, s)
    x = x2.reshape(b, s, HIDDEN)
    return x[:, 0]                        # last_hidden_state[:, 0]  (CLS token), bf16


def bert_arch_forward(params, sent_id, mask):
    cls_hs = bert_encoder(params, sent_id, mask)      # (B, 768) bf16
    return classifier_head(cls_hs, params)            # (B, 4) log-probs, f32


# ---------------- deterministic parameter init ----------------
def init_params(key):
    keys = iter(jax.random.split(key, 64))
    nrm = lambda shape: (0.02 * jax.random.normal(next(keys), shape)).astype(jnp.float32)
    zeros = lambda shape: jnp.zeros(shape, jnp.float32)
    ones = lambda shape: jnp.ones(shape, jnp.float32)
    bf = lambda a: a.astype(jnp.bfloat16)

    params = {
        "word_emb": nrm((VOCAB, HIDDEN)),
        "pos_emb": nrm((MAX_POS, HIDDEN)),
        "type_emb": nrm((N_TYPES, HIDDEN)),
        "emb_ln_g": ones((HIDDEN,)), "emb_ln_b": zeros((HIDDEN,)),
        # classifier-head weights in bf16 (f32 accumulation kept in-kernel)
        "fc1_w": bf(nrm((HIDDEN, 512))), "fc1_b": zeros((512,)),
        "fc2_w": bf(nrm((512, 256))),    "fc2_b": zeros((256,)),
        "fc3_w": bf(nrm((256, N_CLASSES))), "fc3_b": zeros((N_CLASSES,)),
        "layers": [],
    }
    scale = 1.0 / math.sqrt(HEAD_DIM)
    for _ in range(N_LAYERS):
        wq, wk, wv = nrm((HIDDEN, HIDDEN)), nrm((HIDDEN, HIDDEN)), nrm((HIDDEN, HIDDEN))
        bq, bk, bv = zeros((HIDDEN,)), zeros((HIDDEN,)), zeros((HIDDEN,))
        # fold the 1/sqrt(head_dim) attention scale into the Q projection
        w_qkv = jnp.concatenate([wq * scale, wk, wv], axis=1)     # (768, 2304)
        b_qkv = jnp.concatenate([bq * scale, bk, bv], axis=0)     # (2304,)
        params["layers"].append({
            "w_qkv": bf(w_qkv), "b_qkv": b_qkv,
            "wo": bf(nrm((HIDDEN, HIDDEN))), "bo": zeros((HIDDEN,)),
            "ln1_g": ones((HIDDEN,)), "ln1_b": zeros((HIDDEN,)),
            "w_ffn1": bf(nrm((HIDDEN, FFN))), "b_ffn1": zeros((FFN,)),
            "w_ffn2": bf(nrm((FFN, HIDDEN))), "b_ffn2": zeros((HIDDEN,)),
            "ln2_g": ones((HIDDEN,)), "ln2_b": zeros((HIDDEN,)),
        })
    return params


if __name__ == "__main__":
    B, S = 2, 8
    key = jax.random.PRNGKey(0)
    kp, kid = jax.random.split(key)
    params = init_params(kp)

    sent_id = jax.random.randint(kid, (B, S), 0, VOCAB, dtype=jnp.int32)
    mask = jnp.ones((B, S), dtype=jnp.int32)

    out = bert_arch_forward(params, sent_id, mask)
    out = jax.block_until_ready(out)

    assert out.shape == (B, N_CLASSES)
    # rows of exp(log-softmax) must sum to 1
    assert bool(jnp.all(jnp.abs(jnp.sum(jnp.exp(out), axis=1) - 1.0) < 1e-4))
    print("KERNEL_OK")
</pallas_src>

<mosaic_0001>
module attributes {stable_mosaic.version = 11 : i64} {
  func.func @_copy_kernel(%arg0: i32, %arg1: memref<8x128xf32, #tpu.memory_space<vmem>>, %arg2: memref<8x128xf32, #tpu.memory_space<vmem>>) attributes {dimension_semantics = [#tpu.dimension_semantics<arbitrary>], iteration_bounds = array<i64: 1>, scalar_prefetch = 0 : i64, scratch_operands = 0 : i64, tpu.core_type = #tpu.core_type<tc>, window_params = [{pipeline_mode = #tpu.pipeline_mode<synchronous>, transform_indices = @transform_0, window_bounds = array<i64: 8, 128>}, {pipeline_mode = #tpu.pipeline_mode<synchronous>, transform_indices = @transform_1, window_bounds = array<i64: 8, 128>}]} {
    %c0 = arith.constant 0 : index
    %c0_0 = arith.constant 0 : index
    %0 = vector.load %arg1[%c0, %c0_0] : memref<8x128xf32, #tpu.memory_space<vmem>>, vector<8x128xf32>
    %c0_1 = arith.constant 0 : index
    %c0_2 = arith.constant 0 : index
    %1 = vector.load %arg2[%c0_1, %c0_2] : memref<8x128xf32, #tpu.memory_space<vmem>>, vector<8x128xf32>
    tpu.vector_store %arg2[%c0_1, %c0_2], %0 {strides = array<i32>} : memref<8x128xf32, #tpu.memory_space<vmem>>, vector<8x128xf32>,
    return
  }
  func.func @transform_0(%arg0: i32) -> (i32, i32) {
    %c0_i32 = arith.constant 0 : i32
    %c0_i32_0 = arith.constant 0 : i32
    %c0_i32_1 = arith.constant 0 : i32
    return %c0_i32, %c0_i32_0 : i32, i32
  }
  func.func @transform_1(%arg0: i32) -> (i32, i32) {
    %c0_i32 = arith.constant 0 : i32
    %c0_i32_0 = arith.constant 0 : i32
    %c0_i32_1 = arith.constant 0 : i32
    return %c0_i32, %c0_i32_0 : i32, i32
  }
}

module attributes {stable_mosaic.version = 11 : i64} {
  func.func @_layernorm_kernel(%arg0: i32, %arg1: memref<8x768xbf16, #tpu.memory_space<vmem>>, %arg2: memref<1x768xf32, #tpu.memory_space<vmem>>, %arg3: memref<1x768xf32, #tpu.memory_space<vmem>>, %arg4: memref<8x768xbf16, #tpu.memory_space<vmem>>) attributes {dimension_semantics = [#tpu.dimension_semantics<parallel>], iteration_bounds = array<i64: 2>, scalar_prefetch = 0 : i64, scratch_operands = 0 : i64, tpu.core_type = #tpu.core_type<tc>, window_params = [{transform_indices = @transform_0, window_bounds = array<i64: 8, 768>}, {pipeline_mode = #tpu.pipeline_mode<synchronous>, transform_indices = @transform_1, window_bounds = array<i64: 1, 768>}, {pipeline_mode = #tpu.pipeline_mode<synchronous>, transform_indices = @transform_2, window_bounds = array<i64: 1, 768>}, {transform_indices = @transform_3, window_bounds = array<i64: 8, 768>}]} {
    %c0 = arith.constant 0 : index
    %c0_0 = arith.constant 0 : index
    %0 = vector.load %arg1[%c0, %c0_0] : memref<8x768xbf16, #tpu.memory_space<vmem>>, vector<8x768xbf16>
    %1 = arith.extf %0 : vector<8x768xbf16> to vector<8x768xf32>
    %cst = arith.constant dense<0.000000e+00> : vector<8xf32>
    %2 = vector.multi_reduction <add>, %1, %cst [1] : vector<8x768xf32> to vector<8xf32>
    %3 = vector.shape_cast %2 : vector<8xf32> to vector<8x1xf32>
    %cst_1 = arith.constant 7.680000e+02 : f32
    %4 = vector.broadcast %cst_1 : f32 to vector<8x1xf32>
    %5 = arith.divf %3, %4 : vector<8x1xf32>
    %6 = vector.broadcast %5 : vector<8x1xf32> to vector<8x768xf32>
    %7 = arith.subf %1, %6 : vector<8x768xf32>
    %8 = arith.mulf %7, %7 : vector<8x768xf32>
    %cst_2 = arith.constant dense<0.000000e+00> : vector<8xf32>
    %9 = vector.multi_reduction <add>, %8, %cst_2 [1] : vector<8x768xf32> to vector<8xf32>
    %10 = vector.shape_cast %9 : vector<8xf32> to vector<8x1xf32>
    %cst_3 = arith.constant 7.680000e+02 : f32
    %11 = vector.broadcast %cst_3 : f32 to vector<8x1xf32>
    %12 = arith.divf %10, %11 : vector<8x1xf32>
    %13 = vector.broadcast %5 : vector<8x1xf32> to vector<8x768xf32>
    %14 = arith.subf %1, %13 : vector<8x768xf32>
    %cst_4 = arith.constant 9.99999996E-13 : f32
    %15 = vector.broadcast %cst_4 : f32 to vector<8x1xf32>
    %16 = arith.addf %12, %15 : vector<8x1xf32>
    %17 = math.rsqrt %16 : vector<8x1xf32>
    %18 = vector.broadcast %17 : vector<8x1xf32> to vector<8x768xf32>
    %19 = arith.mulf %14, %18 : vector<8x768xf32>
    %c0_5 = arith.constant 0 : index
    %c0_6 = arith.constant 0 : index
    %20 = vector.load %arg2[%c0_5, %c0_6] : memref<1x768xf32, #tpu.memory_space<vmem>>, vector<1x768xf32>
    %21 = vector.broadcast %20 : vector<1x768xf32> to vector<8x768xf32>
    %22 = arith.mulf %19, %21 : vector<8x768xf32>
    %c0_7 = arith.constant 0 : index
    %c0_8 = arith.constant 0 : index
    %23 = vector.load %arg3[%c0_7, %c0_8] : memref<1x768xf32, #tpu.memory_space<vmem>>, vector<1x768xf32>
    %24 = vector.broadcast %23 : vector<1x768xf32> to vector<8x768xf32>
    %25 = arith.addf %22, %24 : vector<8x768xf32>
    %26 = arith.truncf %25 : vector<8x768xf32> to vector<8x768xbf16>
    %c0_9 = arith.constant 0 : index
    %c0_10 = arith.constant 0 : index
    %27 = vector.load %arg4[%c0_9, %c0_10] : memref<8x768xbf16, #tpu.memory_space<vmem>>, vector<8x768xbf16>
    tpu.vector_store %arg4[%c0_9, %c0_10], %26 {strides = array<i32>} : memref<8x768xbf16, #tpu.memory_space<vmem>>, vector<8x768xbf16>,
    return
  }
  func.func @transform_0(%arg0: i32) -> (i32, i32) {
    %c0_i32 = arith.constant 0 : i32
    %c0_i32_0 = arith.constant 0 : i32
    return %arg0, %c0_i32 : i32, i32
  }
  func.func @transform_1(%arg0: i32) -> (i32, i32) {
    %c0_i32 = arith.constant 0 : i32
    %c0_i32_0 = arith.constant 0 : i32
    %c0_i32_1 = arith.constant 0 : i32
    return %c0_i32, %c0_i32_0 : i32, i32
  }
  func.func @transform_2(%arg0: i32) -> (i32, i32) {
    %c0_i32 = arith.constant 0 : i32
    %c0_i32_0 = arith.constant 0 : i32
    %c0_i32_1 = arith.constant 0 : i32
    return %c0_i32, %c0_i32_0 : i32, i32
  }
  func.func @transform_3(%arg0: i32) -> (i32, i32) {
    %c0_i32 = arith.constant 0 : i32
    %c0_i32_0 = arith.constant 0 : i32
    return %arg0, %c0_i32 : i32, i32
  }
}

</mosaic_0001>

<bundles_post_ra>
// kernel: tpu_custom_call.1
= control target key start
LH: loop header
LB: loop body
LE: loop exit
PB: predicated region body
PF: predicated region fallthrough
CT: control target
= control target key end

     0   :  { %6 = vsyncpa [#allocation3], 0  ;;  %s124_s0 = inlined_call_operand.hbm [shape: f32[8,128], index: 0, kind: input, shape index: {}]   ;;  %s125_s1 = inlined_call_operand.hbm [shape: f32[8,128], index: 1, kind: output, shape index: {}]  }
   0x1   :  { %7 = vsyncpa [#allocation4], 0  ;;  %s88_s6 = smov [#allocation2]   ;;  %s40_s10 = scalar_lea.hbm %s124_s0, 128 }
   0x2   :  { %s14_s7 = sshll.u32 %s88_s6, 4  ;;  %p41_p0 = scmp.ne.s32.totalorder %s124_s0, %s40_s10  ;;  %s15_s7 = int_to_ptr.vmem [resolvable:$true] %s14_s7 }
   0x3   :  { %p44_p1 = scmp.lt.u32.totalorder %s40_s10, %s124_s0 }
   0x5   :  { %p46_p2 = pnand %p44_p1, %p41_p0 }
   0x7   :  { %49 = shalt.err (!%p46_p2)
}
   0x8   :  { %s50_s15 = scalar_lea.vmem %s15_s7, 128  ;;  %p55_p4 = scmp.lt.s32.totalorder %s15_s7, %s15_s7 }
   0x9   :  { %p51_p3 = scmp.ne.s32.totalorder %s15_s7, %s50_s15  ;;  %p56_p5 = scmp.lt.s32.totalorder %s50_s15, %s50_s15 }
   0xb   :  { %p57_p6 = por %p56_p5, %p55_p4 }
   0xd   :  { %p58_p7 = pnand %p57_p6, %p51_p3 }
   0xf   :  { %61 = shalt.err (!%p58_p7)
}
  0x10   :  { %17 = dma.hbm_to_vmem [thread:$0]  %s124_s0, 128, %s15_s7, [#allocation3]  }
  0x11   :  { %84 = dma.done.wait [#allocation3], 128  }
  0x12   :  { %85 = vsyncadd [#allocation3], 4294967168  ;;  %s89_s18 = smov [#allocation5]   ;;  %v21_v0 = vld [vmem:[#allocation2] sm:$0xff] }
  0x13   :  { %s29_s19 = sshll.u32 %s89_s18, 4  ;;  %22 = vst [vmem:[#allocation5] sm:$0xff] %v21_v0  ;;  %s30_s19 = int_to_ptr.vmem [resolvable:$true] %s29_s19 }
  0x14   :  { %s62_s20 = scalar_lea.vmem %s30_s19, 128  ;;  %p67_p9 = scmp.lt.s32.totalorder %s30_s19, %s30_s19 }
  0x15   :  { %p63_p8 = scmp.ne.s32.totalorder %s30_s19, %s62_s20  ;;  %p68_p10 = scmp.lt.s32.totalorder %s62_s20, %s62_s20 }
  0x17   :  { %p69_p11 = por %p68_p10, %p67_p9 }
  0x19   :  { %p70_p12 = pnand %p69_p11, %p63_p8 }
  0x1b   :  { %73 = shalt.err (!%p70_p12)
}
  0x1c   :  { %s74_s23 = scalar_lea.hbm %s125_s1, 128 }
  0x1d   :  { %p75_p13 = scmp.ne.s32.totalorder %s125_s1, %s74_s23  ;;  %p78_p0 = scmp.lt.u32.totalorder %s74_s23, %s125_s1 }
  0x1f   :  { %p80_p1 = pnand %p78_p0, %p75_p13 }
  0x21   :  { %83 = shalt.err (!%p80_p1)
}
  0x22   :  { %32 = dma.vmem_to_hbm [thread:$0]  %s30_s19, 128, %s125_s1, [#allocation4]  }
  0x23   :  { %86 = dma.done.wait [#allocation4], 128  }
  0x24   :  { %87 = vsyncadd [#allocation4], 4294967168 }
  0x25   :  { %36 = vsyncpa [#allocation3], 1 }
  0x26   :  { %37 = vsyncpa [#allocation4], 1 }

// kernel: tpu_custom_call.1
= control target key start
LH: loop header
LB: loop body
LE: loop exit
PB: predicated region body
PF: predicated region fallthrough
CT: control target
= control target key end

     0   :  { %8 = vsyncpa [#allocation3], 0  ;;  %s884_s0 = inlined_call_operand.hbm [shape: bf16[16,768], index: 0, kind: input, shape index: {}]   ;;  %s885_s1 = inlined_call_operand.hbm [shape: f32[1,768], index: 1, kind: input, shape index: {}]   ;;  %s886_s2 = inlined_call_operand.vmem [shape: f32[1,768], index: 2, kind: input, shape index: {}]   ;;  %s887_s3 = inlined_call_operand.hbm [shape: bf16[16,768], index: 3, kind: output, shape index: {}]  }
   0x1   :  { %10 = vsyncpa [#allocation3 + $0x1], 0 }
   0x2   :  { %11 = vsyncpa [#allocation6], 0 }
   0x3   :  { %12 = vsyncpa [#allocation4], 0 }
   0x4   :  { %14 = vsyncpa [#allocation4 + $0x1], 0  ;;  %s676_s12 = smov 0   ;;  %s678_s13 = smov 0  }
   0x5   :  { %s680_s14 = smov 0   ;;  %s682_s15 = smov 0  }
   0x6 LB: > { %s697_s16 = sadd.s32 4294967295, %s651_s15   ;;  %s444_s17 = sadd.s32 4294967294, %s651_s15   ;;  %s651_s15 = sphi %s682_s15, %s911_s15   ;;  %s647_s14 = sphi %s680_s14, %s910_s14   ;;  %s643_s13 = sphi %s678_s13, %s909_s13   ;;  %s639_s12 = sphi %s676_s12, %s908_s12  }
   0x7   : > { %p40_p0 = scmp.ne.s32.totalorder %s643_s13, %s639_s12  ;;  %p888_p1 = scmp.eq.s32.totalorder %s697_s16, 0 }
   0x8   : > { %p112_p3 = scmp.eq.s32.totalorder %s444_s17, 1  ;;  %p445_p5 = scmp.ge.s32.totalorder %s651_s15, 1 }
   0x9   : > { %p706_p4 = por %p888_p1, %p40_p0  ;;  %p119_p7 = scmp.lt.s32.totalorder %s651_s15, 3 }
   0xa   : > { %p711_p6 = por %p112_p3, %p40_p0  ;;  %s653_s21 = smov [#allocation5]  }
   0xb   : > { %s891_s18 = scalar_select %p706_p4, 1, 0 }
   0xc   : > { %s892_s19 = scalar_select %p711_p6, 1, 0 }
   0xd   : > { %p716_p8 = pnand %p445_p5, %p119_p7  ;;  %s132_s22 = sshll.u32 %s653_s21, 4  ;;  %s133_s22 = int_to_ptr.vmem [resolvable:$true] %s132_s22 }
   0xe   : > { %s724_s23 = sadd.s32 1, %s651_s15   ;;  %s27_s27 = sadd.s32 1, %s647_s14 }
   0xf   : > { %s893_s20 = scalar_select %p716_p8, 1, 0 }
  0x10   : > { %p472_p10 = pneg %p716_p8  ;;  %s24_s25 = ssub.s32 %s651_s15, %s724_s23 }
  0x11   : > { %p734_p12 = scmp.eq.s32.totalorder %s24_s25, 0  ;;  %s523_s30 = scalar_lea.hbm %s885_s1, 96 }
  0x12   : > { %p728_p11 = pnand %p472_p10, %p888_p1  ;;  %p524_p0 = scmp.ne.s32.totalorder %s885_s1, %s523_s30 }
  0x13   : > { %s895_s26 = scalar_select %p734_p12, 1, 0 }
  0x14   : > { %p525_p3 = pneg %p728_p11  ;;  %p530_p10 = scmp.lt.u32.totalorder %s523_s30, %s885_s1 }
  0x16   : > { %p526_p5 = pnand %p525_p3, %p524_p0 }
  0x18   : > { %p527_p7 = pneg %p526_p5 }
  0x1a   : > { %p532_p9 = pnand %p530_p10, %p527_p7 }
  0x1c   : > { %535 = shalt.err (!%p532_p9)
}
  0x1d   : > { %s536_s8 = scalar_lea.vmem %s133_s22, 96  ;;  %p544_p6 = scmp.lt.s32.totalorder %s133_s22, %s133_s22 }
  0x1e   : > { %p537_p1 = scmp.ne.s32.totalorder %s133_s22, %s536_s8  ;;  %p545_p4 = scmp.lt.s32.totalorder %s536_s8, %s536_s8 }
  0x20   : > { %p539_p2 = pnand %p537_p1, %p525_p3  ;;  %p546_p8 = por %p545_p4, %p544_p6 }
  0x22   : > { %p540_p13 = pneg %p539_p2 }
  0x24   : > { %p547_p12 = pnand %p546_p8, %p540_p13 }
  0x26   : > { %550 = shalt.err (!%p547_p12)
}
  0x27   : > { %475 = dma.hbm_to_vmem [thread:$0]  (!%p728_p11), %s885_s1, 96, %s133_s22, [#allocation6]  }
  0x28   : > { %p896_p1 = scmp.ne.s32.totalorder %s895_s26, 0  ;;  %p35_p2 = scmp.eq.s32.totalorder %s651_s15, 0 }
  0x29   : > { %p897_p4 = scmp.ne.s32.totalorder %s647_s14, %s643_s13  ;;  %p898_p6 = scmp.eq.s32.totalorder %s697_s16, 1 }
  0x2a   : > { %s760_s11 = scalar_select %p896_p1, %s647_s14, %s27_s27  }
  0x2b   : > { %p768_p8 = por %p898_p6, %p897_p4  ;;  %p485_p9 = scmp.lt.s32.totalorder %s651_s15, 2 }
  0x2c   : > { %s146_s21 = sand.u32 1, %s647_s14   ;;  %p900_p12 = pmov %p897_p4 }
  0x2d   : > { %s460_s24 = smul.u32 24, %s146_s21  ;;  %s147_s4 = scalar_lea.sflag [#allocation3], %s146_s21 }
  0x2e   : > { %p36_p13 = por %p35_p2, %p900_p12  ;;  %s461_s25 = smul.u32 384, %s651_s15 }
  0x2f   : > { %s150_s29 = scalar_lea.vmem [#allocation2], %s460_s24  ;;  %s556_s8 = scalar_lea.hbm %s884_s0, 768 }
  0x30   : > { %p778_p0 = pnand %p485_p9, %p36_p13  ;;  %s785_s27 = scalar_lea.hbm %s884_s0, %s461_s25 }
  0x31   : > { %s158_s30 = sshll.u32 %s150_s29, 4  ;;  %s551_s5 = scalar_lea.hbm %s785_s27, 384  ;;  %s787_s30 = int_to_ptr.vmem [resolvable:$true] %s158_s30 }
  0x32   : > { %p552_p11 = scmp.ne.s32.totalorder %s785_s27, %s551_s5  ;;  %p553_p3 = pneg %p778_p0 }
  0x33   : > { %p557_p10 = scmp.lt.u32.totalorder %s785_s27, %s884_s0  ;;  %p558_p1 = scmp.lt.u32.totalorder %s556_s8, %s551_s5 }
  0x34   : > { %p554_p5 = pnand %p553_p3, %p552_p11  ;;  %p560_p4 = scmp.lt.u32.totalorder %s551_s5, %s785_s27 }
  0x35   : > { %p559_p2 = por %p558_p1, %p557_p10 }
  0x36   : > { %p555_p7 = pneg %p554_p5 }
  0x37   : > { %p561_p6 = por %p560_p4, %p559_p2 }
  0x39   : > { %p562_p9 = pnand %p561_p6, %p555_p7 }
  0x3b   : > { %565 = shalt.err (!%p562_p9)
}
  0x3c   : > { %s566_s21 = scalar_lea.vmem %s787_s30, 384  ;;  %s654_s24 = smov [#allocation2]  }
  0x3d   : > { %p567_p12 = scmp.ne.s32.totalorder %s787_s30, %s566_s21  ;;  %s571_s25 = sshll.u32 %s654_s24, 4  ;;  %s572_s25 = int_to_ptr.vmem [resolvable:$false] %s571_s25 }
  0x3e   : > { %s573_s22 = scalar_lea.vmem %s572_s25, 768  ;;  %p574_p5 = scmp.lt.s32.totalorder %s787_s30, %s572_s25 }
  0x3f   : > { %p569_p13 = pnand %p567_p12, %p553_p3  ;;  %p575_p10 = scmp.lt.s32.totalorder %s573_s22, %s566_s21 }
  0x41   : > { %p570_p11 = pneg %p569_p13  ;;  %p576_p1 = por %p575_p10, %p574_p5 }
  0x43   : > { %p577_p2 = pnand %p576_p1, %p570_p11 }
  0x45   : > { %580 = shalt.err (!%p577_p2)
}
  0x46   : > { %479 = dma.hbm_to_vmem [thread:$0]  (!%p778_p0), %s785_s27, 384, %s787_s30, %s147_s4  }
  0x47   : > { %p902_p7 = scmp.ne.s32.totalorder %s893_s20, 0 }
  0x48   : > { %s817_s26 = sand.u32 (!%p902_p7), 1, %s643_s13   ;;  %p903_p3 = scmp.ne.s32.totalorder (!%p902_p7), %s891_s18, 0 }
  0x49   : > { %167 = sbr.rel (%p902_p7) target bundleno = 435 (0x1b3), region = 32  ;;  %s170_s5 = scalar_lea.sflag (!%p902_p7), [#allocation3], %s817_s26 }
  0x4a   : > { %s462_s29 = smul.u32 (!%p902_p7), 24, %s817_s26 }
  0x4c   : > { %s173_s6 = scalar_lea.vmem (!%p902_p7), [#allocation2], %s462_s29 }
  0x50   : > { %626 = dma.done.wait (%p903_p3), %s170_s5, 384  }
  0x51   : > { %628 = vsyncadd (%p903_p3), %s170_s5, 4294966912  ;;  %p904_p0 = scmp.eq.s32.totalorder %s697_s16, 0 }
  0x53   : > { %630 = dma.done.wait (%p904_p0), [#allocation6], 96   ;;  %p905_p4 = pmov %p904_p0 }
  0x54   : > { %v200_v0 = vld [vmem:[%s173_s6] sm:$0xff]  ;;  %v201_v1 = vld [vmem:[%s173_s6 + $0x8] sm:$0xff]  ;;  %v202_v5 = vld [vmem:[%s173_s6 + $0x10] sm:$0xff]  ;;  %v248_v35 = vlaneseq  ;;  %s463_s28 = smul.u32 384, %s697_s16  ;;  %s199_s27 = scalar_lea.vmem [#allocation7], %s462_s29 }
  0x55   : > { %632 = vsyncadd (%p905_p4), [#allocation6], 4294967200  ;;  %v203_v2 = vunpack.c.l.bf16 %v200_v0  ;;  %v204_v3 = vunpack.c.h.bf16 %v200_v0  ;;  %v205_v4 = vunpack.c.l.bf16 %v201_v1  ;;  %v206_v6 = vunpack.c.h.bf16 %v201_v1  ;;  %v246_v40 = vld [vmem:[#allocation5] sm:$0x3f]  ;;  %v284_v45 = vld [vmem:[%s886_s2] sm:$0x3f] }
  0x56   : > { %v207_v8 = vunpack.c.l.bf16 %v202_v5  ;;  %v208_v10 = vunpack.c.h.bf16 %v202_v5  ;;  %v249_v37 = vshrl.u32 %v248_v35, 7  ;;  %s364_s30 = sshll.u32 %s199_s27, 4  ;;  %s840_s8 = scalar_lea.hbm %s887_s3, %s463_s28  ;;  %s842_s30 = int_to_ptr.vmem [resolvable:$true] %s364_s30 }
  0x57   : > { %v209_v7 = vadd.f32 %v204_v3, %v203_v2  ;;  %s350_s16 = scalar_lea.sflag [#allocation4], %s817_s26  ;;  %s581_s9 = scalar_lea.vmem %s842_s30, 384 }
  0x58   : > { %v250_v38 = vsub.s32 0, %v249_v37  ;;  %v254_v39 = vsub.s32 1, %v249_v37  ;;  %v258_v41 = vsub.s32 2, %v249_v37  ;;  %v262_v42 = vsub.s32 3, %v249_v37  ;;  %p582_p6 = scmp.ne.s32.totalorder %s842_s30, %s581_s9  ;;  %s655_s10 = smov [#allocation7]  }
  0x59   : > { %v210_v9 = vadd.f32 %v209_v7, %v205_v4  ;;  %v266_v43 = vsub.s32 4, %v249_v37  ;;  %v270_v44 = vsub.s32 5, %v249_v37  ;;  %s585_s21 = sshll.u32 %s655_s10, 4  ;;  %s586_s21 = int_to_ptr.vmem [resolvable:$false] %s585_s21 }
  0x5a   : > { %v251_v46 = vrot.slane %v246_v40, %v250_v38  ;;  %v255_v47 = vrot.slane %v246_v40, %v254_v39  ;;  %v259_v48 = vrot.slane %v246_v40, %v258_v41  ;;  %v263_v49 = vrot.slane %v246_v40, %v262_v42  ;;  %p583_p9 = pnand %p582_p6, %p768_p8  ;;  %s587_s24 = scalar_lea.vmem %s586_s21, 768 }
  0x5b   : > { %v211_v11 = vadd.f32 %v210_v9, %v206_v6  ;;  %v267_v50 = vrot.slane %v246_v40, %v266_v43  ;;  %v271_v51 = vrot.slane %v246_v40, %v270_v44  ;;  %v289_v53 = vrot.slane %v284_v45, %v250_v38  ;;  %p588_p13 = scmp.lt.s32.totalorder %s842_s30, %s586_s21  ;;  %p589_p11 = scmp.lt.s32.totalorder %s587_s24, %s581_s9 }
  0x5c   : > { %v293_v54 = vrot.slane %v284_v45, %v254_v39  ;;  %v297_v55 = vrot.slane %v284_v45, %v258_v41  ;;  %v301_v56 = vrot.slane %v284_v45, %v262_v42  ;;  %v305_v63 = vrot.slane %v284_v45, %v266_v43  ;;  %p584_p12 = pneg %p583_p9 }
  0x5d   : > { %v212_v12 = vadd.f32 %v211_v11, %v207_v8  ;;  %v309_v0 = vrot.slane %v284_v45, %v270_v44  ;;  %p590_p5 = por %p589_p11, %p588_p13 }
  0x5f   : > { %v213_v13 = vadd.f32 %v212_v12, %v208_v10  ;;  %p591_p10 = pnand %p590_p5, %p584_p12 }
  0x61   : > { %214 = vadd.xlane.f32.xlu0 %v213_v13 }
  0xee   : > { %v215_v14 = vpop.xlane.xlu0 %214 }
  0xef   : > { %v217_v15 = vmul.f32 0.0013020834, %v215_v14 }
  0xf1   : > { %v218_v16 = vsub.f32 %v203_v2, %v217_v15  ;;  %v219_v17 = vsub.f32 %v204_v3, %v217_v15  ;;  %v220_v18 = vsub.f32 %v205_v4, %v217_v15  ;;  %v221_v19 = vsub.f32 %v206_v6, %v217_v15 }
  0xf2   : > { %v222_v22 = vsub.f32 %v207_v8, %v217_v15  ;;  %v223_v25 = vsub.f32 %v208_v10, %v217_v15 }
  0xf3   : > { %v224_v20 = vmul.f32 %v218_v16, %v218_v16  ;;  %v225_v21 = vmul.f32 %v219_v17, %v219_v17  ;;  %v226_v23 = vmul.f32 %v220_v18, %v220_v18  ;;  %v227_v26 = vmul.f32 %v221_v19, %v221_v19 }
  0xf4   : > { %v228_v28 = vmul.f32 %v222_v22, %v222_v22  ;;  %v229_v30 = vmul.f32 %v223_v25, %v223_v25 }
  0xf5   : > { %v230_v24 = vadd.f32 %v225_v21, %v224_v20 }
  0xf7   : > { %v231_v27 = vadd.f32 %v230_v24, %v226_v23 }
  0xf9   : > { %v232_v29 = vadd.f32 %v231_v27, %v227_v26 }
  0xfb   : > { %v233_v31 = vadd.f32 %v232_v29, %v228_v28 }
  0xfd   : > { %v234_v32 = vadd.f32 %v233_v31, %v229_v30 }
  0xff   : > { %235 = vadd.xlane.f32.xlu0 %v234_v32 }
 0x18c   : > { %v236_v33 = vpop.xlane.xlu0 %235 }
 0x18d   : > { %v237_v34 = vmul.f32 0.0013020834, %v236_v33 }
 0x18f   : > { %v238_v36 = vadd.f32 1e-12, %v237_v34 }
 0x191   : > { %521 = vrsqrt.f32 %v238_v36 }
 0x19b   : > { %v522_v52 = vpop.eup %521 }
 0x19c   : > { %v240_v57 = vmul.f32 %v522_v52, %v218_v16  ;;  %v241_v58 = vmul.f32 %v522_v52, %v219_v17  ;;  %v242_v59 = vmul.f32 %v522_v52, %v220_v18  ;;  %v243_v60 = vmul.f32 %v522_v52, %v221_v19 }
 0x19d   : > { %v244_v61 = vmul.f32 %v522_v52, %v222_v22  ;;  %v245_v62 = vmul.f32 %v522_v52, %v223_v25 }
 0x19e   : > { %v278_v1 = vmul.f32 %v251_v46, %v240_v57  ;;  %v279_v2 = vmul.f32 %v255_v47, %v241_v58  ;;  %v280_v3 = vmul.f32 %v259_v48, %v242_v59  ;;  %v281_v4 = vmul.f32 %v263_v49, %v243_v60 }
 0x19f   : > { %v282_v5 = vmul.f32 %v267_v50, %v244_v61  ;;  %v283_v6 = vmul.f32 %v271_v51, %v245_v62 }
 0x1a0   : > { %v316_v7 = vadd.f32 %v289_v53, %v278_v1  ;;  %v317_v8 = vadd.f32 %v293_v54, %v279_v2  ;;  %v318_v9 = vadd.f32 %v297_v55, %v280_v3  ;;  %v319_v10 = vadd.f32 %v301_v56, %v281_v4 }
 0x1a1   : > { %v320_v11 = vadd.f32 %v305_v63, %v282_v5  ;;  %v321_v12 = vadd.f32 %v309_v0, %v283_v6 }
 0x1a2   : > { %v457_v13 = vpack.c.bf16 %v317_v8, %v316_v7  ;;  %v458_v14 = vpack.c.bf16 %v319_v10, %v318_v9 }
 0x1a3   : > { %v459_v15 = vpack.c.bf16 %v321_v12, %v320_v11 }
 0x1a4   : > { %346 = vst [vmem:[%s199_s27] sm:$0xff] %v457_v13  ;;  %347 = vst [vmem:[%s199_s27 + $0x8] sm:$0xff] %v458_v14 }
 0x1a5   : > { %348 = vst [vmem:[%s199_s27 + $0x10] sm:$0xff] %v459_v15 }
 0x1a6   : > { %594 = shalt.err (!%p591_p10)
}
 0x1a7   : > { %s595_s25 = scalar_lea.hbm %s840_s8, 384  ;;  %s599_s29 = scalar_lea.hbm %s887_s3, 768 }
 0x1a8   : > { %p596_p1 = scmp.ne.s32.totalorder %s840_s8, %s595_s25  ;;  %p600_p3 = scmp.lt.u32.totalorder %s840_s8, %s887_s3 }
 0x1a9   : > { %p601_p0 = scmp.lt.u32.totalorder %s599_s29, %s595_s25  ;;  %p603_p6 = scmp.lt.u32.totalorder %s595_s25, %s840_s8 }
 0x1aa   : > { %p597_p2 = pnand %p596_p1, %p768_p8 }
 0x1ab   : > { %p602_p4 = por %p601_p0, %p600_p3 }
 0x1ac   : > { %p598_p7 = pneg %p597_p2 }
 0x1ad   : > { %p604_p9 = por %p603_p6, %p602_p4 }
 0x1af   : > { %p605_p12 = pnand %p604_p9, %p598_p7 }
 0x1b1   : > { %608 = shalt.err (!%p605_p12)
}
 0x1b2   : > { %470 = dma.vmem_to_hbm [thread:$0]  (%p768_p8), %s842_s30, 384, %s840_s8, %s350_s16  }
 0x1b3 PF: > { %s376_s18 = sand.u32 1, %s639_s12   ;;  %p906_p13 = scmp.ne.s32.totalorder %s892_s19, 0 }
 0x1b4   : > { %p907_p11 = scmp.ge.s32.totalorder %s651_s15, 2  ;;  %s377_s20 = scalar_lea.sflag [#allocation4], %s376_s18 }
 0x1b6   : > { %p481_p5 = pnand %p907_p11, %p906_p13 }
 0x1b8   : > { %634 = dma.done.wait (!%p481_p5), %s377_s20, 384  }
 0x1b9   : > { %636 = vsyncadd (!%p481_p5), %s377_s20, 4294966912  ;;  %p17_p10 = scmp.ge.s32.totalorder %s724_s23, 4   ;;  %s908_s12 = smov %s643_s13 }
 0x1ba   : > { %s909_s13 = smov %s647_s14  ;;  %s910_s14 = smov %s760_s11 }
 0x1bb   : > { %s911_s15 = smov %s724_s23  ;;  %19 = sbr.rel (!%p17_p10) target bundleno = 6 (0x6), region = 81 }
 0x1c2   :  { %382 = vsyncpa [#allocation3], 1 }
 0x1c3   :  { %384 = vsyncpa [#allocation3 + $0x1], 1 }
 0x1c4   :  { %385 = vsyncpa [#allocation6], 1 }
 0x1c5   :  { %386 = vsyncpa [#allocation4], 1 }
 0x1c6   :  { %388 = vsyncpa [#allocation4 + $0x1], 1 }

</bundles_post_ra>
